<compile_context>
chip_gen: v5e
topology: v5e:2x2
jax: 0.10.0
libtpu: 0.0.40
codegen_flags: <defaults>
</compile_context>

<pallas_src>
import math

import jax
import jax.numpy as jnp
from jax import lax
from jax.experimental import pallas as pl
from jax.experimental.pallas import tpu as pltpu


# ----------------------------------------------------------------------------
# Tile-size helper
# ----------------------------------------------------------------------------
def _pick_tile(total, cap, multiple):
    """Largest t dividing `total` with t <= cap and (t % multiple == 0 or t == total)."""
    if total <= cap:
        return total
    for t in range(min(cap, total), 0, -1):
        if total % t == 0 and (t % multiple == 0 or t == total):
            return t
    return total  # fallback: one big block (always correct)


# ----------------------------------------------------------------------------
# Conv path: Conv2d(C, C, 3, stride=2, padding=1) as a single K=9C matmul
# ----------------------------------------------------------------------------
def downsample_conv2d(x_nchw, weight_oihw, bias):
    N, C, H, W = x_nchw.shape
    Ho = (H + 2 - 3) // 2 + 1
    Wo = (W + 2 - 3) // 2 + 1
    rows = Ho * Wo
    K = 9 * C

    x = jnp.transpose(x_nchw, (0, 2, 3, 1))                      # NHWC
    xp = jnp.pad(x, ((0, 0), (1, 1), (1, 1), (0, 0)))            # pad=1

    # im2col with K ordered (kh, kw, ci): (N, Ho*Wo, 9*C)
    patches = jnp.concatenate(
        [
            xp[:, kh : kh + 2 * Ho : 2, kw : kw + 2 * Wo : 2, :]
            for kh in range(3)
            for kw in range(3)
        ],
        axis=-1,
    ).reshape(N, rows, K)

    # torch weight (Cout, Cin, kh, kw) -> (kh, kw, Cin, Cout) -> (9*C, Cout)
    w2 = jnp.transpose(weight_oihw, (2, 3, 1, 0)).reshape(K, C)
    b2 = bias.reshape(1, C)

    # --- VMEM-budgeted tile sizes ---
    # patches block ~<= 2 MiB; weight block capped so double-buffering stays comfortable.
    tm_cap = max(8, (2 * 1024 * 1024) // (K * 4))
    TM = _pick_tile(rows, min(512, tm_cap), 8)
    tn_cap = 256 if (K * 256 * 4 * 2) <= (12 * 1024 * 1024) else 128
    TN = _pick_tile(C, tn_cap, 128)

    grid = (N, rows // TM, C // TN)

    def kernel(p_ref, w_ref, b_ref, o_ref):
        # One long-K matmul on the MXU; fp32 accumulate; bias epilogue on the VPU.
        acc = jnp.dot(p_ref[0, :, :], w_ref[:, :], preferred_element_type=jnp.float32)
        o_ref[0, :, :] = (acc + b_ref[0, :].astype(jnp.float32)).astype(o_ref.dtype)

    out = pl.pallas_call(
        kernel,
        out_shape=jax.ShapeDtypeStruct((N, rows, C), x.dtype),
        grid=grid,
        in_specs=[
            pl.BlockSpec((1, TM, K), lambda n, r, c: (n, r, 0)),
            pl.BlockSpec((K, TN), lambda n, r, c: (0, c)),
            pl.BlockSpec((1, TN), lambda n, r, c: (0, c)),
        ],
        out_specs=pl.BlockSpec((1, TM, TN), lambda n, r, c: (n, r, c)),
        compiler_params=pltpu.CompilerParams(
            dimension_semantics=("parallel", "parallel", "parallel"),
            vmem_limit_bytes=32 * 1024 * 1024,
        ),
    )(patches, w2, b2)

    out = out.reshape(N, Ho, Wo, C)
    return jnp.transpose(out, (0, 3, 1, 2))                       # back to NCHW


# ----------------------------------------------------------------------------
# Pool path: AvgPool2d(2, 2) reading the input directly (no phase materialization)
# ----------------------------------------------------------------------------
def downsample_avgpool2d(x_nchw):
    N, C, H, W = x_nchw.shape
    Ho, Wo = H // 2, W // 2

    x = jnp.transpose(x_nchw, (0, 2, 3, 1))                       # NHWC
    x = x[:, : 2 * Ho, : 2 * Wo, :]                               # floor semantics
    xr = x.reshape(N, Ho, 2, Wo, 2 * C)                           # free row-major reshape

    th_cap = max(1, (2 * 1024 * 1024) // (2 * Wo * 2 * C * 4))
    TH = _pick_tile(Ho, th_cap, 1)
    grid = (N, Ho // TH)

    def kernel(x_ref, o_ref):
        # x_ref block: (1, TH, 2, Wo, 2*C).  Row phases are a leading (untiled) dim;
        # column phases live in the lane dim as [x(2j), x(2j+1)] pairs of width C.
        top = x_ref[0, :, 0, :, :].astype(jnp.float32)            # (TH, Wo, 2C)
        bot = x_ref[0, :, 1, :, :].astype(jnp.float32)            # (TH, Wo, 2C)
        s = top + bot
        o_ref[0, :, :, :] = ((s[:, :, :C] + s[:, :, C:]) * 0.25).astype(o_ref.dtype)

    out = pl.pallas_call(
        kernel,
        out_shape=jax.ShapeDtypeStruct((N, Ho, Wo, C), x.dtype),
        grid=grid,
        in_specs=[pl.BlockSpec((1, TH, 2, Wo, 2 * C), lambda n, r: (n, r, 0, 0, 0))],
        out_specs=pl.BlockSpec((1, TH, Wo, C), lambda n, r: (n, r, 0, 0)),
        compiler_params=pltpu.CompilerParams(
            dimension_semantics=("parallel", "parallel"),
            vmem_limit_bytes=32 * 1024 * 1024,
        ),
    )(xr)

    return jnp.transpose(out, (0, 3, 1, 2))                       # back to NCHW


# ----------------------------------------------------------------------------
# Module-equivalent container
# ----------------------------------------------------------------------------
class Downsample:
    """JAX/Pallas equivalent of the PyTorch Downsample module (dims=2 only)."""

    def __init__(self, channels, use_conv, dims=2, *, key):
        assert dims == 2, "only dims=2 implemented"  # TODO(synk): dims=1/3
        self.channels = channels
        self.use_conv = use_conv
        self.dims = dims
        if use_conv:
            # Deterministic init mimicking torch.nn.Conv2d defaults
            # (kaiming-uniform weight, uniform bias, bound = 1/sqrt(fan_in)).
            kw, kb = jax.random.split(key)
            fan_in = channels * 3 * 3
            bound = 1.0 / math.sqrt(fan_in)
            self.weight = jax.random.uniform(
                kw, (channels, channels, 3, 3), jnp.float32, -bound, bound
            )
            self.bias = jax.random.uniform(kb, (channels,), jnp.float32, -bound, bound)
        else:
            self.weight = None
            self.bias = None

    def __call__(self, x):
        assert x.shape[1] == self.channels
        if self.use_conv:
            return downsample_conv2d(x, self.weight, self.bias)
        return downsample_avgpool2d(x)


# ----------------------------------------------------------------------------
# Pure-JAX references for verification
# ----------------------------------------------------------------------------
def _ref_conv(x, w, b):
    y = lax.conv_general_dilated(
        x, w,
        window_strides=(2, 2),
        padding=((1, 1), (1, 1)),
        dimension_numbers=("NCHW", "OIHW", "NCHW"),
        precision=lax.Precision.HIGHEST,
    )
    return y + b[None, :, None, None]


def _ref_avgpool(x):
    N, C, H, W = x.shape
    return x.reshape(N, C, H // 2, 2, W // 2, 2).mean(axis=(3, 5))


if __name__ == "__main__":
    key = jax.random.PRNGKey(0)
    k_x, k_mod = jax.random.split(key)

    N, C, H, W = 2, 4, 16, 16
    x = jax.random.normal(k_x, (N, C, H, W), jnp.float32)

    # use_conv=True path
    mod_conv = Downsample(C, use_conv=True, dims=2, key=k_mod)
    y_conv = jax.block_until_ready(mod_conv(x))
    assert y_conv.shape == (N, C, H // 2, W // 2), y_conv.shape
    y_ref = _ref_conv(x, mod_conv.weight, mod_conv.bias)
    assert jnp.allclose(y_conv, y_ref, rtol=1e-3, atol=1e-3), (
        float(jnp.max(jnp.abs(y_conv - y_ref)))
    )

    # use_conv=False path
    mod_pool = Downsample(C, use_conv=False, dims=2, key=k_mod)
    y_pool = jax.block_until_ready(mod_pool(x))
    assert y_pool.shape == (N, C, H // 2, W // 2), y_pool.shape
    p_ref = _ref_avgpool(x)
    assert jnp.allclose(y_pool, p_ref, rtol=1e-5, atol=1e-5), (
        float(jnp.max(jnp.abs(y_pool - p_ref)))
    )

    print("KERNEL_OK")
</pallas_src>

<mosaic_0001>
module attributes {stable_mosaic.version = 11 : i64} {
  func.func @kernel(%arg0: i32, %arg1: i32, %arg2: i32, %arg3: memref<1x64x36xf32, #tpu.memory_space<vmem>>, %arg4: memref<36x4xf32, #tpu.memory_space<vmem>>, %arg5: memref<1x4xf32, #tpu.memory_space<vmem>>, %arg6: memref<1x64x4xf32, #tpu.memory_space<vmem>>) attributes {dimension_semantics = [#tpu.dimension_semantics<parallel>, #tpu.dimension_semantics<parallel>, #tpu.dimension_semantics<parallel>], iteration_bounds = array<i64: 2, 1, 1>, scalar_prefetch = 0 : i64, scratch_operands = 0 : i64, tpu.core_type = #tpu.core_type<tc>, window_params = [{transform_indices = @transform_0, window_bounds = array<i64: 1, 64, 36>}, {transform_indices = @transform_1, window_bounds = array<i64: 36, 4>}, {transform_indices = @transform_2, window_bounds = array<i64: 1, 4>}, {transform_indices = @transform_3, window_bounds = array<i64: 1, 64, 4>}]} {
    %c0 = arith.constant 0 : index
    %c0_0 = arith.constant 0 : index
    %c0_1 = arith.constant 0 : index
    %0 = vector.load %arg3[%c0, %c0_0, %c0_1] : memref<1x64x36xf32, #tpu.memory_space<vmem>>, vector<1x64x36xf32>
    %1 = vector.shape_cast %0 : vector<1x64x36xf32> to vector<64x36xf32>
    %c0_2 = arith.constant 0 : index
    %c0_3 = arith.constant 0 : index
    %2 = vector.load %arg4[%c0_2, %c0_3] : memref<36x4xf32, #tpu.memory_space<vmem>>, vector<36x4xf32>
    %cst = arith.constant dense<0.000000e+00> : vector<64x4xf32>
    %3 = tpu.matmul %1, %2, %cst {dimension_numbers = #tpu.dot_dimension_numbers<[1], [0], [0], [1], [0, 0, 1, 1], [], []>} : vector<64x36xf32>, vector<36x4xf32>, vector<64x4xf32> -> vector<64x4xf32>
    %c0_4 = arith.constant 0 : index
    %c0_5 = arith.constant 0 : index
    %4 = vector.load %arg5[%c0_4, %c0_5] : memref<1x4xf32, #tpu.memory_space<vmem>>, vector<1x4xf32>
    %5 = vector.shape_cast %4 : vector<1x4xf32> to vector<4xf32>
    %6 = vector.shape_cast %5 : vector<4xf32> to vector<1x4xf32>
    %7 = vector.broadcast %6 : vector<1x4xf32> to vector<64x4xf32>
    %8 = arith.addf %3, %7 : vector<64x4xf32>
    %c0_6 = arith.constant 0 : index
    %c0_7 = arith.constant 0 : index
    %c0_8 = arith.constant 0 : index
    %9 = vector.load %arg6[%c0_6, %c0_7, %c0_8] : memref<1x64x4xf32, #tpu.memory_space<vmem>>, vector<1x64x4xf32>
    %10 = vector.shape_cast %9 : vector<1x64x4xf32> to vector<64x4xf32>
    %11 = vector.shape_cast %8 : vector<64x4xf32> to vector<1x64x4xf32>
    tpu.vector_store %arg6[%c0_6, %c0_7, %c0_8], %11 {strides = array<i32>} : memref<1x64x4xf32, #tpu.memory_space<vmem>>, vector<1x64x4xf32>,
    return
  }
  func.func @transform_0(%arg0: i32, %arg1: i32, %arg2: i32) -> (i32, i32, i32) {
    %c0_i32 = arith.constant 0 : i32
    %c0_i32_0 = arith.constant 0 : i32
    return %arg0, %arg1, %c0_i32 : i32, i32, i32
  }
  func.func @transform_1(%arg0: i32, %arg1: i32, %arg2: i32) -> (i32, i32) {
    %c0_i32 = arith.constant 0 : i32
    %c0_i32_0 = arith.constant 0 : i32
    return %c0_i32, %arg2 : i32, i32
  }
  func.func @transform_2(%arg0: i32, %arg1: i32, %arg2: i32) -> (i32, i32) {
    %c0_i32 = arith.constant 0 : i32
    %c0_i32_0 = arith.constant 0 : i32
    return %c0_i32, %arg2 : i32, i32
  }
  func.func @transform_3(%arg0: i32, %arg1: i32, %arg2: i32) -> (i32, i32, i32) {
    %c0_i32 = arith.constant 0 : i32
    return %arg0, %arg1, %arg2 : i32, i32, i32
  }
}

</mosaic_0001>

<bundles_post_ra>
// kernel: tpu_custom_call.1
= control target key start
LH: loop header
LB: loop body
LE: loop exit
PB: predicated region body
PF: predicated region fallthrough
CT: control target
= control target key end

     0   :  { %s587_s12 = smov 0   ;;  %s589_s13 = smov 0   ;;  %s661_s0 = inlined_call_operand.vmem [shape: f32[2,64,36], index: 0, kind: input, shape index: {}]   ;;  %s662_s1 = inlined_call_operand.vmem [shape: f32[36,4], index: 1, kind: input, shape index: {}]   ;;  %s663_s2 = inlined_call_operand.vmem [shape: f32[1,4], index: 2, kind: input, shape index: {}]   ;;  %s664_s3 = inlined_call_operand.vmem [shape: f32[2,64,4], index: 3, kind: output, shape index: {}]  }
   0x1   :  { %s591_s14 = smov 0  }
   0x2 LB: > { %s32_s15 = sadd.s32 1, %s561_s13  ;;  %p485_p0 = scmp.ge.s32.totalorder %s565_s14, 1  ;;  %s565_s14 = sphi %s591_s14, %s13_s14   ;;  %s561_s13 = sphi %s589_s13, %s666_s13   ;;  %s557_s12 = sphi %s587_s12, %s665_s12  }
   0x3   : > { %p34_p1 = scmp.ge.s32.totalorder %s32_s15, 2  ;;  %p184_p2 = scmp.lt.s32.totalorder %s565_s14, 3 }
   0x5   : > { %s668_s15 = smov (%p34_p1, %s32_s15), 0  ;;  %p185_p3 = pnand %p485_p0, %p184_p2 }
   0x6   : > { %p227_p4 = scmp.lt.s32.totalorder (!%p185_p3), %s557_s12, 1 }
   0x7   : > { %188 = sbr.rel (%p185_p3) target bundleno = 166 (0xa6), region = 32 }
   0xc   : > { %v268_v0 = vld [vmem:[%s662_s1 + $0x20] sm:$0xf]  ;;  %vm298_vm0 = vcmask 1043456   ;;  %v267_v1 = vld [vmem:[%s662_s1 + $0x18] sm:$0xff]  ;;  %v266_v2 = vld [vmem:[%s662_s1 + $0x10] sm:$0xff]  ;;  %s670_s12 = smov (!%p227_p4, %s557_s12), 1 }
   0xd   : > { %504 = vmatpush.msk.msra.mxu2 %vm298_vm0, %v268_v0  ;;  %505 = vmatpush.msk.msra.mxu3 %vm298_vm0, %v268_v0  ;;  %v265_v3 = vld [vmem:[%s662_s1 + $0x8] sm:$0xff]  ;;  %s501_s24 = sshll.u32 %s670_s12, 6  ;;  %v264_v4 = vld [vmem:[%s662_s1] sm:$0xff]  ;;  %vm273_vm1 = vcmask 293888   ;;  %vm343_vm2 = vcmask 31744  }
   0xe   : > { %490 = vmatpush.msk.msra.mxu0 %vm298_vm0, %v268_v0  ;;  %503 = vmatpush.msk.msra.mxu1 %vm298_vm0, %v268_v0  ;;  %s234_s27 = scalar_lea.vmem %s661_s0, %s501_s24  ;;  %v542_v13 = vld [vmem:[%s663_s2] ss:$0 sm:$0xff]  ;;  %s254_s7 = scalar_lea.vmem %s664_s3, %s501_s24 }
   0xf   : > { %507 = vmatpush.msra.mxu2 %v267_v1  ;;  %508 = vmatpush.msra.mxu3 %v267_v1  ;;  %v260_v5 = vld [vmem:[%s234_s27 + $0x20] sm:$0xff]  ;;  %v262_v6 = vld [vmem:[%s234_s27 + $0x30] sm:$0xff]  ;;  %v261_v9 = vld [vmem:[%s234_s27 + $0x28] sm:$0xff] }
  0x10   : > { %314 = vmatpush.msra.mxu0 %v267_v1  ;;  %506 = vmatpush.msra.mxu1 %v267_v1  ;;  %v256_v7 = vld [vmem:[%s234_s27] sm:$0xff]  ;;  %v258_v8 = vld [vmem:[%s234_s27 + $0x10] sm:$0xff]  ;;  %v263_v10 = vld [vmem:[%s234_s27 + $0x38] sm:$0xff] }
  0x11   : > { %510 = vmatpush.msra.mxu2 %v266_v2  ;;  %511 = vmatpush.msra.mxu3 %v266_v2  ;;  %v257_v11 = vld [vmem:[%s234_s27 + $0x8] sm:$0xff]  ;;  %v259_v12 = vld [vmem:[%s234_s27 + $0x18] sm:$0xff] }
  0x12   : > { %315 = vmatpush.msra.mxu0 %v266_v2  ;;  %509 = vmatpush.msra.mxu1 %v266_v2 }
  0x13   : > { %513 = vmatpush.msra.mxu2 %v265_v3  ;;  %514 = vmatpush.msra.mxu3 %v265_v3 }
  0x14   : > { %316 = vmatpush.msra.mxu0 %v265_v3  ;;  %512 = vmatpush.msra.mxu1 %v265_v3 }
  0x15   : > { %516 = vmatpush.msra.mxu2 %v264_v4  ;;  %517 = vmatpush.msra.mxu3 %v264_v4 }
  0x16   : > { %495 = vmatmul.msk.f32.vlgmr.msra.gmra.mxu2 %vm273_vm1, %v260_v5  ;;  %497 = vmatmul.msk.f32.vlgmr.msra.gmra.mxu3 %vm273_vm1, %v262_v6 }
  0x17   : > { %317 = vmatpush.msra.mxu0 %v264_v4  ;;  %515 = vmatpush.msra.mxu1 %v264_v4 }
  0x18   : > { %491 = vmatmul.msk.f32.vlgmr.msra.gmra.mxu0 %vm273_vm1, %v256_v7  ;;  %493 = vmatmul.msk.f32.vlgmr.msra.gmra.mxu1 %vm273_vm1, %v258_v8 }
  0x1e   : > { %496 = vmatmul.msk.f32.gmra.mxu2 %vm273_vm1, %v261_v9  ;;  %498 = vmatmul.msk.f32.gmra.mxu3 %vm273_vm1, %v263_v10 }
  0x20   : > { %492 = vmatmul.msk.f32.gmra.mxu0 %vm273_vm1, %v257_v11  ;;  %494 = vmatmul.msk.f32.gmra.mxu1 %vm273_vm1, %v259_v12 }
  0x95   : > { %v319_v14 = vpop.f32.mrf.mxu0  ;;  %v325_v15 = vpop.f32.mrf.mxu1 }
  0x96   : > { %v320_v16 = vadd.f32 %v542_v13, %v319_v14  ;;  %v326_v17 = vadd.f32 %v542_v13, %v325_v15 }
  0x98   : > { %344 = vst.msk [vmem:[%s254_s7] sm:$0xff] %vm343_vm2, %v320_v16 }
  0x99   : > { %346 = vst.msk [vmem:[%s254_s7 + $0x10] sm:$0xff] %vm343_vm2, %v326_v17  ;;  %v331_v18 = vpop.f32.mrf.mxu2  ;;  %v337_v19 = vpop.f32.mrf.mxu3 }
  0x9a   : > { %v332_v20 = vadd.f32 %v542_v13, %v331_v18  ;;  %v338_v21 = vadd.f32 %v542_v13, %v337_v19 }
  0x9c   : > { %348 = vst.msk [vmem:[%s254_s7 + $0x20] sm:$0xff] %vm343_vm2, %v332_v20 }
  0x9d   : > { %350 = vst.msk [vmem:[%s254_s7 + $0x30] sm:$0xff] %vm343_vm2, %v338_v21  ;;  %v322_v22 = vpop.f32.mrf.mxu0  ;;  %v328_v23 = vpop.f32.mrf.mxu1 }
  0x9e   : > { %v323_v24 = vadd.f32 %v542_v13, %v322_v22  ;;  %v329_v25 = vadd.f32 %v542_v13, %v328_v23 }
  0xa0   : > { %345 = vst.msk [vmem:[%s254_s7 + $0x8] sm:$0xff] %vm343_vm2, %v323_v24 }
  0xa1   : > { %347 = vst.msk [vmem:[%s254_s7 + $0x18] sm:$0xff] %vm343_vm2, %v329_v25  ;;  %v334_v26 = vpop.f32.mrf.mxu2  ;;  %v340_v27 = vpop.f32.mrf.mxu3 }
  0xa2   : > { %v335_v28 = vadd.f32 %v542_v13, %v334_v26  ;;  %v341_v29 = vadd.f32 %v542_v13, %v340_v27 }
  0xa4   : > { %349 = vst.msk [vmem:[%s254_s7 + $0x28] sm:$0xff] %vm343_vm2, %v335_v28 }
  0xa5   : > { %351 = vst.msk [vmem:[%s254_s7 + $0x38] sm:$0xff] %vm343_vm2, %v341_v29 }
  0xa6 PF: > { %s13_s14 = sadd.s32 1, %s565_s14   ;;  %s665_s12 = smov %s561_s13 }
  0xa7   : > { %p10_p5 = scmp.ge.s32.totalorder %s13_s14, 4   ;;  %s666_s13 = smov %s668_s15 }
  0xa9   :  { %12 = sbr.rel (!%p10_p5) target bundleno = 2 (0x2), region = 68 }

</bundles_post_ra>
